<compile_context>
chip_gen: v7x
topology: tpu7x:2x2x1
jax: 0.10.0
libtpu: 0.0.40
codegen_flags: <defaults>
</compile_context>

<pallas_src>
import functools

import jax
import jax.numpy as jnp
from jax.experimental import pallas as pl
from jax.experimental.pallas import tpu as pltpu

# Make the f32 matmul path exact on both the Pallas/MXU side and the XLA
# reference side so the 1e-5 comparison is meaningful everywhere.
jax.config.update("jax_default_matmul_precision", "highest")

_LAYERS = ("layer_middle", "layer_4", "layer_5", "layer_6")


def _round_up(n, m):
    return ((n + m - 1) // m) * m


def _pad_to(x, shape):
    return jnp.pad(x, [(0, t - s) for s, t in zip(x.shape, shape)])


def _pad_width(n):
    # Lane-friendly width for intermediate activations: 27->32, 54->64, 108->128.
    return _round_up(n, 128) if n > 64 else pl.next_power_of_2(max(n, 8))


def prepare_decoder_params(params, compute_dtype=jnp.float32):
    """Transpose PyTorch Linear weights to [in, out] and zero-pad so that the
    padded output width of layer i equals the padded contraction width of
    layer i+1.  Run once, outside the per-call jit.

    The final layer keeps its true output width (216) so the kernel can write
    the real-width result directly.  Zero padding is bit-exact through
    matmul + bias + ReLU.
    """
    prepared = []
    in_p = params[_LAYERS[0]][0].shape[1]          # input width stays unpadded (27)
    last = len(_LAYERS) - 1
    for idx, name in enumerate(_LAYERS):
        w, b = params[name]                        # w: [out, in], b: [out]  (PyTorch)
        out_f, _ = w.shape
        out_p = out_f if idx == last else _pad_width(out_f)
        wt = _pad_to(jnp.asarray(w, jnp.float32).T, (in_p, out_p)).astype(compute_dtype)
        bb = _pad_to(jnp.asarray(b, jnp.float32).reshape(1, out_f), (1, out_p))
        prepared.append((wt, bb))
        in_p = out_p
    return tuple(prepared)


def _decoder_kernel(x_ref,
                    w0_ref, b0_ref, w1_ref, b1_ref,
                    w2_ref, b2_ref, w3_ref, b3_ref,
                    o_ref):
    # Whole hot path (4 MXU matmuls + bias add + ReLU) per batch tile.
    def layer(h, w_ref, b_ref):
        acc = jnp.dot(h.astype(w_ref.dtype), w_ref[...],
                      preferred_element_type=jnp.float32)
        return jnp.maximum(acc + b_ref[...], 0.0)

    h = x_ref[...].astype(jnp.float32)
    h = layer(h, w0_ref, b0_ref)
    h = layer(h, w1_ref, b1_ref)
    h = layer(h, w2_ref, b2_ref)
    h = layer(h, w3_ref, b3_ref)
    o_ref[...] = h.astype(o_ref.dtype)


def _default_batch_tile(B):
    if B <= 256:
        return _round_up(B, 8)
    # >= 2 grid steps so the "parallel" batch axis shards across both v7x TCs.
    return min(1024, _round_up(pl.cdiv(B, 2), 8))


@functools.partial(jax.jit, static_argnames=("batch_tile",))
def decoder_forward(x, prepared_params, batch_tile=None):
    """x: [B, in_channels//8] float32.  prepared_params: prepare_decoder_params(...)."""
    B, d_in = x.shape
    (w0, b0), (w1, b1), (w2, b2), (w3, b3) = prepared_params
    d_out = w3.shape[1]

    if batch_tile is None:
        batch_tile = _default_batch_tile(B)
    grid = (pl.cdiv(B, batch_tile),)

    batch_map = lambda i: (i, 0)
    full_map = lambda i: (0, 0)

    in_specs = [pl.BlockSpec((batch_tile, d_in), batch_map)]
    for w, b in ((w0, b0), (w1, b1), (w2, b2), (w3, b3)):
        # Grid-invariant operands: tiny (~180 KB total) weights/biases stay
        # resident in VMEM for the whole grid.
        in_specs.append(pl.BlockSpec(w.shape, full_map))
        in_specs.append(pl.BlockSpec(b.shape, full_map))

    flops = 2 * B * sum(int(w.shape[0]) * int(w.shape[1]) for w in (w0, w1, w2, w3))
    weight_bytes = sum(int(a.size) * a.dtype.itemsize
                       for a in (w0, b0, w1, b1, w2, b2, w3, b3))
    bytes_accessed = B * (d_in + d_out) * x.dtype.itemsize + weight_bytes

    return pl.pallas_call(
        _decoder_kernel,
        out_shape=jax.ShapeDtypeStruct((B, d_out), x.dtype),
        grid_spec=pltpu.PrefetchScalarGridSpec(
            num_scalar_prefetch=0,
            grid=grid,
            in_specs=in_specs,
            out_specs=pl.BlockSpec((batch_tile, d_out), batch_map),
        ),
        compiler_params=pltpu.CompilerParams(
            dimension_semantics=("parallel",)),
        cost_estimate=pl.CostEstimate(
            flops=flops, transcendentals=0, bytes_accessed=bytes_accessed),
    )(x, w0, b0, w1, b1, w2, b2, w3, b3)


def init_decoder_params(key, in_channels=216):
    """Deterministic synthetic params in PyTorch Linear layout: W [out,in], b [out]."""
    dims = [in_channels // 8, in_channels // 8, in_channels // 4,
            in_channels // 2, in_channels]
    params = {}
    for idx, name in enumerate(_LAYERS):
        fan_in, fan_out = dims[idx], dims[idx + 1]
        key, kw, kb = jax.random.split(key, 3)
        bound = 1.0 / jnp.sqrt(fan_in)
        w = jax.random.uniform(kw, (fan_out, fan_in), jnp.float32, -bound, bound)
        b = jax.random.uniform(kb, (fan_out,), jnp.float32, -bound, bound)
        params[name] = (w, b)
    return params


def decoder_reference(x, params):
    h = x
    for name in _LAYERS:
        w, b = params[name]
        h = jnp.maximum(h @ w.T + b, 0.0)
    return h


if __name__ == "__main__":
    key = jax.random.PRNGKey(0)
    kp, kx = jax.random.split(key)

    in_channels = 216
    batch = 8
    params = init_decoder_params(kp, in_channels)
    prepared = prepare_decoder_params(params)           # f32 exact path
    x = jax.random.normal(kx, (batch, in_channels // 8), jnp.float32)

    out = decoder_forward(x, prepared)
    out = jax.block_until_ready(out)

    ref = decoder_reference(x, params)
    assert out.shape == (batch, in_channels), out.shape
    assert jnp.allclose(out, ref, atol=1e-5, rtol=1e-5), "mismatch vs reference"

    print("KERNEL_OK")
</pallas_src>

<mosaic_0001>
module attributes {stable_mosaic.version = 11 : i64} {
  func.func @_decoder_kernel(%arg0: i32, %arg1: memref<8x27xf32, #tpu.memory_space<vmem>>, %arg2: memref<27x32xf32, #tpu.memory_space<vmem>>, %arg3: memref<1x32xf32, #tpu.memory_space<vmem>>, %arg4: memref<32x64xf32, #tpu.memory_space<vmem>>, %arg5: memref<1x64xf32, #tpu.memory_space<vmem>>, %arg6: memref<64x128xf32, #tpu.memory_space<vmem>>, %arg7: memref<1x128xf32, #tpu.memory_space<vmem>>, %arg8: memref<128x216xf32, #tpu.memory_space<vmem>>, %arg9: memref<1x216xf32, #tpu.memory_space<vmem>>, %arg10: memref<8x216xf32, #tpu.memory_space<vmem>>) attributes {dimension_semantics = [#tpu.dimension_semantics<parallel>], iteration_bounds = array<i64: 1>, scalar_prefetch = 0 : i64, scratch_operands = 0 : i64, tpu.core_type = #tpu.core_type<tc>, window_params = [{transform_indices = @transform_0, window_bounds = array<i64: 8, 27>}, {pipeline_mode = #tpu.pipeline_mode<synchronous>, transform_indices = @transform_1, window_bounds = array<i64: 27, 32>}, {pipeline_mode = #tpu.pipeline_mode<synchronous>, transform_indices = @transform_2, window_bounds = array<i64: 1, 32>}, {pipeline_mode = #tpu.pipeline_mode<synchronous>, transform_indices = @transform_3, window_bounds = array<i64: 32, 64>}, {pipeline_mode = #tpu.pipeline_mode<synchronous>, transform_indices = @transform_4, window_bounds = array<i64: 1, 64>}, {pipeline_mode = #tpu.pipeline_mode<synchronous>, transform_indices = @transform_5, window_bounds = array<i64: 64, 128>}, {pipeline_mode = #tpu.pipeline_mode<synchronous>, transform_indices = @transform_6, window_bounds = array<i64: 1, 128>}, {pipeline_mode = #tpu.pipeline_mode<synchronous>, transform_indices = @transform_7, window_bounds = array<i64: 128, 216>}, {pipeline_mode = #tpu.pipeline_mode<synchronous>, transform_indices = @transform_8, window_bounds = array<i64: 1, 216>}, {transform_indices = @transform_9, window_bounds = array<i64: 8, 216>}]} {
    %c0 = arith.constant 0 : index
    %c0_0 = arith.constant 0 : index
    %0 = vector.load %arg1[%c0, %c0_0] : memref<8x27xf32, #tpu.memory_space<vmem>>, vector<8x27xf32>
    %c0_1 = arith.constant 0 : index
    %c0_2 = arith.constant 0 : index
    %1 = vector.load %arg2[%c0_1, %c0_2] : memref<27x32xf32, #tpu.memory_space<vmem>>, vector<27x32xf32>
    %cst = arith.constant dense<0.000000e+00> : vector<8x32xf32>
    %2 = tpu.matmul %0, %1, %cst {dimension_numbers = #tpu.dot_dimension_numbers<[1], [0], [0], [1], [0, 0, 1, 1], [], []>, precision = #tpu.contract_precision<fp32>} : vector<8x27xf32>, vector<27x32xf32>, vector<8x32xf32> -> vector<8x32xf32>
    %c0_3 = arith.constant 0 : index
    %c0_4 = arith.constant 0 : index
    %3 = vector.load %arg3[%c0_3, %c0_4] : memref<1x32xf32, #tpu.memory_space<vmem>>, vector<1x32xf32>
    %4 = vector.broadcast %3 : vector<1x32xf32> to vector<8x32xf32>
    %5 = arith.addf %2, %4 : vector<8x32xf32>
    %cst_5 = arith.constant 0.000000e+00 : f32
    %6 = vector.broadcast %cst_5 : f32 to vector<8x32xf32>
    %7 = arith.maximumf %5, %6 : vector<8x32xf32>
    %c0_6 = arith.constant 0 : index
    %c0_7 = arith.constant 0 : index
    %8 = vector.load %arg4[%c0_6, %c0_7] : memref<32x64xf32, #tpu.memory_space<vmem>>, vector<32x64xf32>
    %cst_8 = arith.constant dense<0.000000e+00> : vector<8x64xf32>
    %9 = tpu.matmul %7, %8, %cst_8 {dimension_numbers = #tpu.dot_dimension_numbers<[1], [0], [0], [1], [0, 0, 1, 1], [], []>, precision = #tpu.contract_precision<fp32>} : vector<8x32xf32>, vector<32x64xf32>, vector<8x64xf32> -> vector<8x64xf32>
    %c0_9 = arith.constant 0 : index
    %c0_10 = arith.constant 0 : index
    %10 = vector.load %arg5[%c0_9, %c0_10] : memref<1x64xf32, #tpu.memory_space<vmem>>, vector<1x64xf32>
    %11 = vector.broadcast %10 : vector<1x64xf32> to vector<8x64xf32>
    %12 = arith.addf %9, %11 : vector<8x64xf32>
    %cst_11 = arith.constant 0.000000e+00 : f32
    %13 = vector.broadcast %cst_11 : f32 to vector<8x64xf32>
    %14 = arith.maximumf %12, %13 : vector<8x64xf32>
    %c0_12 = arith.constant 0 : index
    %c0_13 = arith.constant 0 : index
    %15 = vector.load %arg6[%c0_12, %c0_13] : memref<64x128xf32, #tpu.memory_space<vmem>>, vector<64x128xf32>
    %cst_14 = arith.constant dense<0.000000e+00> : vector<8x128xf32>
    %16 = tpu.matmul %14, %15, %cst_14 {dimension_numbers = #tpu.dot_dimension_numbers<[1], [0], [0], [1], [0, 0, 1, 1], [], []>, precision = #tpu.contract_precision<fp32>} : vector<8x64xf32>, vector<64x128xf32>, vector<8x128xf32> -> vector<8x128xf32>
    %c0_15 = arith.constant 0 : index
    %c0_16 = arith.constant 0 : index
    %17 = vector.load %arg7[%c0_15, %c0_16] : memref<1x128xf32, #tpu.memory_space<vmem>>, vector<1x128xf32>
    %18 = vector.broadcast %17 : vector<1x128xf32> to vector<8x128xf32>
    %19 = arith.addf %16, %18 : vector<8x128xf32>
    %cst_17 = arith.constant 0.000000e+00 : f32
    %20 = vector.broadcast %cst_17 : f32 to vector<8x128xf32>
    %21 = arith.maximumf %19, %20 : vector<8x128xf32>
    %c0_18 = arith.constant 0 : index
    %c0_19 = arith.constant 0 : index
    %22 = vector.load %arg8[%c0_18, %c0_19] : memref<128x216xf32, #tpu.memory_space<vmem>>, vector<128x216xf32>
    %cst_20 = arith.constant dense<0.000000e+00> : vector<8x216xf32>
    %23 = tpu.matmul %21, %22, %cst_20 {dimension_numbers = #tpu.dot_dimension_numbers<[1], [0], [0], [1], [0, 0, 1, 1], [], []>, precision = #tpu.contract_precision<fp32>} : vector<8x128xf32>, vector<128x216xf32>, vector<8x216xf32> -> vector<8x216xf32>
    %c0_21 = arith.constant 0 : index
    %c0_22 = arith.constant 0 : index
    %24 = vector.load %arg9[%c0_21, %c0_22] : memref<1x216xf32, #tpu.memory_space<vmem>>, vector<1x216xf32>
    %25 = vector.broadcast %24 : vector<1x216xf32> to vector<8x216xf32>
    %26 = arith.addf %23, %25 : vector<8x216xf32>
    %cst_23 = arith.constant 0.000000e+00 : f32
    %27 = vector.broadcast %cst_23 : f32 to vector<8x216xf32>
    %28 = arith.maximumf %26, %27 : vector<8x216xf32>
    %c0_24 = arith.constant 0 : index
    %c0_25 = arith.constant 0 : index
    %29 = vector.load %arg10[%c0_24, %c0_25] : memref<8x216xf32, #tpu.memory_space<vmem>>, vector<8x216xf32>
    tpu.vector_store %arg10[%c0_24, %c0_25], %28 {strides = array<i32>} : memref<8x216xf32, #tpu.memory_space<vmem>>, vector<8x216xf32>,
    return
  }
  func.func @transform_0(%arg0: i32) -> (i32, i32) {
    %c0_i32 = arith.constant 0 : i32
    %c0_i32_0 = arith.constant 0 : i32
    return %arg0, %c0_i32 : i32, i32
  }
  func.func @transform_1(%arg0: i32) -> (i32, i32) {
    %c0_i32 = arith.constant 0 : i32
    %c0_i32_0 = arith.constant 0 : i32
    %c0_i32_1 = arith.constant 0 : i32
    return %c0_i32, %c0_i32_0 : i32, i32
  }
  func.func @transform_2(%arg0: i32) -> (i32, i32) {
    %c0_i32 = arith.constant 0 : i32
    %c0_i32_0 = arith.constant 0 : i32
    %c0_i32_1 = arith.constant 0 : i32
    return %c0_i32, %c0_i32_0 : i32, i32
  }
  func.func @transform_3(%arg0: i32) -> (i32, i32) {
    %c0_i32 = arith.constant 0 : i32
    %c0_i32_0 = arith.constant 0 : i32
    %c0_i32_1 = arith.constant 0 : i32
    return %c0_i32, %c0_i32_0 : i32, i32
  }
  func.func @transform_4(%arg0: i32) -> (i32, i32) {
    %c0_i32 = arith.constant 0 : i32
    %c0_i32_0 = arith.constant 0 : i32
    %c0_i32_1 = arith.constant 0 : i32
    return %c0_i32, %c0_i32_0 : i32, i32
  }
  func.func @transform_5(%arg0: i32) -> (i32, i32) {
    %c0_i32 = arith.constant 0 : i32
    %c0_i32_0 = arith.constant 0 : i32
    %c0_i32_1 = arith.constant 0 : i32
    return %c0_i32, %c0_i32_0 : i32, i32
  }
  func.func @transform_6(%arg0: i32) -> (i32, i32) {
    %c0_i32 = arith.constant 0 : i32
    %c0_i32_0 = arith.constant 0 : i32
    %c0_i32_1 = arith.constant 0 : i32
    return %c0_i32, %c0_i32_0 : i32, i32
  }
  func.func @transform_7(%arg0: i32) -> (i32, i32) {
    %c0_i32 = arith.constant 0 : i32
    %c0_i32_0 = arith.constant 0 : i32
    %c0_i32_1 = arith.constant 0 : i32
    return %c0_i32, %c0_i32_0 : i32, i32
  }
  func.func @transform_8(%arg0: i32) -> (i32, i32) {
    %c0_i32 = arith.constant 0 : i32
    %c0_i32_0 = arith.constant 0 : i32
    %c0_i32_1 = arith.constant 0 : i32
    return %c0_i32, %c0_i32_0 : i32, i32
  }
  func.func @transform_9(%arg0: i32) -> (i32, i32) {
    %c0_i32 = arith.constant 0 : i32
    %c0_i32_0 = arith.constant 0 : i32
    return %arg0, %c0_i32 : i32, i32
  }
}

</mosaic_0001>

<bundles_post_ra>
// kernel: decoder_forward.1
= control target key start
LH: loop header
LB: loop body
LE: loop exit
PB: predicated region body
PF: predicated region fallthrough
CT: control target
= control target key end

     0   :  { %vm49_vm0 = vcmask 1042432   ;;  %v4296_v3 = vmov 0.0|0.0   ;;  %vm3287_vm1 = vmmov 0   ;;  %v4298_v9 = vmov 0.0   ;;  %s4278_s0 = inlined_call_operand.vmem [shape: f32[8,27], index: 0, kind: input, shape index: {}]   ;;  %s4279_s1 = inlined_call_operand.vmem [shape: f32[27,32], index: 1, kind: input, shape index: {}]   ;;  %s4280_s2 = inlined_call_operand.vmem [shape: f32[1,32], index: 2, kind: input, shape index: {}]   ;;  %s4281_s3 = inlined_call_operand.vmem [shape: f32[32,64], index: 3, kind: input, shape index: {}]   ;;  %s4282_s4 = inlined_call_operand.vmem [shape: f32[1,64], index: 4, kind: input, shape index: {}]   ;;  %s4283_s5 = inlined_call_operand.vmem [shape: f32[64,128], index: 5, kind: input, shape index: {}]   ;;  %s4284_s6 = inlined_call_operand.vmem [shape: f32[1,128], index: 6, kind: input, shape index: {}]   ;;  %s4285_s7 = inlined_call_operand.vmem [shape: f32[128,216], index: 7, kind: input, shape index: {}]   ;;  %s4286_s8 = inlined_call_operand.vmem [shape: f32[1,216], index: 8, kind: input, shape index: {}]   ;;  %s4287_s9 = inlined_call_operand.hbm [shape: f32[8,216], index: 9, kind: output, shape index: {}]  }
   0x1   :  { %v34_v0 = vld [vmem:[%s4279_s1] sm:$0xff]  ;;  %v35_v1 = vld [vmem:[%s4279_s1 + $0x8] sm:$0xff]  ;;  %v36_v2 = vld [vmem:[%s4279_s1 + $0x10] sm:$0xff]  ;;  %2878 = vmatprep.subr.bf16.mxu0 %v4296_v3  ;;  %2926 = vmatprep.subr.bf16.mxu1 %v4296_v3  ;;  %vm45_vm2 = vcmask 220160  }
   0x2   :  { %v54_v4 = vand.u32 4294901760, %v34_v0  ;;  %v57_v5 = vand.u32 4294901760, %v35_v1  ;;  %v37_v6 = vld [vmem:[%s4279_s1 + $0x18] sm:$0x7]  ;;  %v60_v7 = vand.u32 4294901760, %v36_v2  ;;  %2640 = vmatprep.mubr.msk.f32.mxu0 %vm3287_vm1, %v4298_v9  ;;  %v33_v10 = vld [vmem:[%s4278_s0] sm:$0xff]  ;;  %2728 = vmatprep.mubr.msk.f32.mxu1 %vm3287_vm1, %v4298_v9 }
   0x3   :  { %v51_v8 = vsel %vm49_vm0, %v37_v6, 0 }
   0x4   :  { %v2879_v11 = vpack.c.bf16 %v57_v5, %v54_v4  ;;  %v134_v12 = vsub.f32 %v34_v0, %v54_v4  ;;  %v141_v13 = vsub.f32 %v35_v1, %v57_v5  ;;  %v63_v14 = vand.u32 4294901760, %v51_v8 }
   0x5   :  { %14 = vsyncpa [#allocation3], 0  ;;  %v148_v15 = vsub.f32 %v36_v2, %v60_v7  ;;  %v47_v16 = vsel %vm45_vm2, %v33_v10, 0  ;;  %v539_v42 = vld [vmem:[%s4281_s3] sm:$0xff]  ;;  %v540_v43 = vld [vmem:[%s4281_s3 + $0x8] sm:$0xff]  ;;  %vm550_vm3 = vcmask 261120  }
   0x6   :  { %2880 = vmatpush3.bf16.msra.mxu0 %v2879_v11  ;;  %v2882_v17 = vpack.c.bf16 %v63_v14, %v60_v7  ;;  %v155_v18 = vsub.f32 %v51_v8, %v63_v14  ;;  %v122_v19 = vand.u32 4294901760, %v47_v16  ;;  %v135_v20 = vand.u32 4294901760, %v134_v12  ;;  %v541_v48 = vld [vmem:[%s4281_s3 + $0x10] sm:$0xff]  ;;  %v542_v49 = vld [vmem:[%s4281_s3 + $0x18] sm:$0xff]  ;;  %s3289_s29 = smov [#allocation2]  }
   0x7   :  { %2881 = vmatprep.subr.bf16.mxu0 %v4296_v3  ;;  %v142_v21 = vand.u32 4294901760, %v141_v13  ;;  %v149_v22 = vand.u32 4294901760, %v148_v15  ;;  %v2891_v38 = vpack.c.bf16 %v141_v13, %v134_v12  ;;  %v555_v44 = vand.u32 4294901760, %v539_v42  ;;  %s2507_s30 = sshll.u32 %s3289_s29, 4  ;;  %s2508_s30 = int_to_ptr.vmem [resolvable:$true] %s2507_s30 }
   0x8   :  { %v123_v23 = vsub.f32 %v47_v16, %v122_v19  ;;  %v136_v24 = vsub.f32 %v134_v12, %v135_v20  ;;  %v156_v25 = vand.u32 4294901760, %v155_v18  ;;  %v2894_v39 = vpack.c.bf16 %v155_v18, %v148_v15  ;;  %v2515_v12 = vld [vmem:[%s4280_s2] ss:$0 sm:$0xff]  ;;  %s3262_s10 = scalar_lea.vmem %s2508_s30, 256  ;;  %p3267_p1 = scmp.lt.s32.totalorder %s2508_s30, %s2508_s30 }
   0x9   :  { %v143_v26 = vsub.f32 %v141_v13, %v142_v21  ;;  %v150_v27 = vsub.f32 %v148_v15, %v149_v22  ;;  %v2903_v40 = vpack.c.bf16 %v142_v21, %v135_v20  ;;  %v558_v45 = vand.u32 4294901760, %v540_v43  ;;  %p3263_p0 = scmp.ne.s32.totalorder %s2508_s30, %s3262_s10  ;;  %p3268_p2 = scmp.lt.s32.totalorder %s3262_s10, %s3262_s10 }
   0xa   :  { %2883 = vmatpush3.bf16.msra.mxu0 %v2882_v17  ;;  %v124_v28 = vand.u32 4294901760, %v123_v23  ;;  %v137_v29 = vand.u32 4294901760, %v136_v24  ;;  %v157_v30 = vsub.f32 %v155_v18, %v156_v25  ;;  %v2906_v41 = vpack.c.bf16 %v156_v25, %v149_v22  ;;  %v1041_v24 = vld [vmem:[%s4283_s5 + $0x8] sm:$0xff] }
   0xb   :  { %2884 = vmatprep.subr.bf16.mxu0 %v4296_v3  ;;  %v144_v31 = vand.u32 4294901760, %v143_v26  ;;  %v151_v34 = vand.u32 4294901760, %v150_v27  ;;  %v635_v46 = vsub.f32 %v539_v42, %v555_v44  ;;  %v642_v47 = vsub.f32 %v540_v43, %v558_v45  ;;  %p3269_p3 = por %p3268_p2, %p3267_p1 }
   0xc   :  { %v125_v32 = vsub.f32 %v123_v23, %v124_v28  ;;  %v158_v35 = vand.u32 4294901760, %v157_v30  ;;  %v561_v51 = vand.u32 4294901760, %v541_v48  ;;  %v564_v52 = vand.u32 4294901760, %v542_v49 }
   0xd   :  { %v2885_v33 = vpack.c.bf16 %v144_v31, %v137_v29  ;;  %v2927_v50 = vpack.c.bf16 %v642_v47, %v635_v46  ;;  %v2915_v56 = vpack.c.bf16 %v558_v45, %v555_v44  ;;  %v636_v57 = vand.u32 4294901760, %v635_v46  ;;  %v1043_v29 = vld [vmem:[%s4283_s5 + $0x18] sm:$0xff]  ;;  %p3270_p4 = pnand %p3269_p3, %p3263_p0 }
   0xe   :  { %v126_v36 = vand.u32 4294901760, %v125_v32  ;;  %v2888_v37 = vpack.c.bf16 %v158_v35, %v151_v34  ;;  %v649_v53 = vsub.f32 %v541_v48, %v561_v51  ;;  %v656_v54 = vsub.f32 %v542_v49, %v564_v52  ;;  %v1045_v34 = vld [vmem:[%s4283_s5 + $0x28] sm:$0xff] }
   0xf   :  { %2928 = vmatpush3.bf16.msra.mxu1 %v2927_v50  ;;  %v643_v58 = vand.u32 4294901760, %v642_v47  ;;  %v2918_v59 = vpack.c.bf16 %v564_v52, %v561_v51  ;;  %v637_v60 = vsub.f32 %v635_v46, %v636_v57  ;;  %v1063_v26 = vand.u32 4294901760, %v1041_v24 }
  0x10   :  { %2641 = vmatmul.mubr.f32.vlgmr.msra.gmra.mrb[0].mxu0 %v126_v36  ;;  %2929 = vmatprep.subr.bf16.mxu1 %v4296_v3  ;;  %v2930_v55 = vpack.c.bf16 %v656_v54, %v649_v53  ;;  %v650_v0 = vand.u32 4294901760, %v649_v53  ;;  %v657_v1 = vand.u32 4294901760, %v656_v54  ;;  %v1069_v31 = vand.u32 4294901760, %v1043_v29 }
  0x11   :  { %2886 = vmatpush3.bf16.msra.mxu0 %v2885_v33  ;;  %2651 = vmatprep.mubr.msk.f32.mxu0 %vm3287_vm1, %v4298_v9  ;;  %v644_v61 = vsub.f32 %v642_v47, %v643_v58  ;;  %v638_v62 = vand.u32 4294901760, %v637_v60  ;;  %v2939_v6 = vpack.c.bf16 %v643_v58, %v636_v57  ;;  %v1044_v33 = vld [vmem:[%s4283_s5 + $0x20] sm:$0xff]  ;;  %v1075_v36 = vand.u32 4294901760, %v1045_v34 }
  0x12   :  { %2887 = vmatprep.subr.bf16.mxu0 %v4296_v3  ;;  %v651_v4 = vsub.f32 %v649_v53, %v650_v0  ;;  %v658_v5 = vsub.f32 %v656_v54, %v657_v1  ;;  %v1072_v35 = vand.u32 4294901760, %v1044_v33  ;;  %v3466_v47 = vsub.f32 %v1043_v29, %v1069_v31 }
  0x13   :  { %2931 = vmatpush3.bf16.msra.mxu1 %v2930_v55  ;;  %v645_v63 = vand.u32 4294901760, %v644_v61  ;;  %v3470_v49 = vsub.f32 %v1045_v34, %v1075_v36  ;;  %v3538_v34 = vld [vmem:[%s4285_s7 + $0x28] sm:$0xff]  ;;  %vm1055_vm4 = vcmask 523264   ;;  %vm2499_vm5 = vcmask 719872  }
  0x14   :  { %2932 = vmatprep.subr.bf16.mxu1 %v4296_v3  ;;  %v652_v7 = vand.u32 4294901760, %v651_v4  ;;  %v659_v8 = vand.u32 4294901760, %v658_v5  ;;  %v3468_v48 = vsub.f32 %v1044_v33, %v1072_v35  ;;  %v1166_v57 = vand.u32 4294901760, %v3466_v47 }
  0x15   :  { %2889 = vmatpush3.bf16.msra.mxu0 %v2888_v37  ;;  %v2921_v2 = vpack.c.bf16 %v645_v63, %v638_v62 }
  0x16   :  { %2890 = vmatprep.subr.bf16.mxu0 %v4296_v3  ;;  %v2924_v10 = vpack.c.bf16 %v659_v8, %v652_v7  ;;  %v1167_v60 = vsub.f32 %v3466_v47, %v1166_v57 }
  0x18   :  { %2652 = vmatmul.mubr.f32.vlgmr.msra.gmra.mrb[0].mxu0 %v122_v19  ;;  %v1168_v63 = vand.u32 4294901760, %v1167_v60 }
  0x19   :  { %2892 = vmatpush3.bf16.msra.mxu0 %v2891_v38  ;;  %2662 = vmatprep.mubr.msk.f32.mxu0 %vm3287_vm1, %v4298_v9  ;;  %v3450_v38 = vsub.f32 %v1041_v24, %v1063_v26 }
  0x1a   :  { %2893 = vmatprep.subr.bf16.mxu0 %v4296_v3 }
  0x1b   :  { %v1152_v45 = vand.u32 4294901760, %v3450_v38 }
  0x1d   :  { %2895 = vmatpush3.bf16.msra.mxu0 %v2894_v39  ;;  %v3452_v39 = vpack.c.bf16 %v1075_v36, %v1072_v35  ;;  %v1153_v54 = vsub.f32 %v3450_v38, %v1152_v45  ;;  %v3543_v35 = vld [vmem:[%s4285_s7 + $0x38] sm:$0xff] }
  0x1e   :  { %2896 = vmatprep.subr.bf16.mxu0 %v4296_v3 }
  0x1f   :  { %v1154_v58 = vand.u32 4294901760, %v1153_v54 }
  0x20   :  { %2663 = vmatmul.mubr.f32.vlgmr.msra.gmra.mrb[0].mxu0 %v123_v23  ;;  %v1040_v23 = vld [vmem:[%s4283_s5] sm:$0xff] }
  0x21   :  { %2898 = vmatpush3.bf16.msra.mxu0 %v2879_v11  ;;  %2673 = vmatprep.mubr.msk.f32.mxu0 %vm3287_vm1, %v4298_v9  ;;  %v1060_v25 = vand.u32 4294901760, %v1040_v23 }
  0x22   :  { %2899 = vmatprep.subr.bf16.mxu0 %v4296_v3 }
  0x23   :  { %v3428_v27 = vpack.c.bf16 %v1063_v26, %v1060_v25  ;;  %v3448_v37 = vsub.f32 %v1040_v23, %v1060_v25  ;;  %v1598_v25 = vld [vmem:[%s4285_s7 + $0x8] sm:$0xff]  ;;  %v1600_v26 = vld [vmem:[%s4285_s7 + $0x18] sm:$0xff] }
  0x24   :  { %v1641_v29 = vand.u32 4294901760, %v1598_v25 }
  0x25   :  { %2901 = vmatpush3.bf16.msra.mxu0 %v2882_v17  ;;  %v1145_v44 = vand.u32 4294901760, %v3448_v37 }
  0x26   :  { %2902 = vmatprep.subr.bf16.mxu0 %v4296_v3 }
  0x27   :  { %v1146_v53 = vsub.f32 %v3448_v37, %v1145_v44 }
  0x28   :  { %2674 = vmatmul.mubr.f32.vlgmr.msra.gmra.mrb[0].mxu0 %v124_v28  ;;  %v1042_v28 = vld [vmem:[%s4283_s5 + $0x10] sm:$0xff] }
  0x29   :  { %2904 = vmatpush3.bf16.msra.mxu0 %v2903_v40  ;;  %2684 = vmatprep.mubr.msk.f32.mxu0 %vm3287_vm1, %v4298_v9  ;;  %v1066_v30 = vand.u32 4294901760, %v1042_v28  ;;  %v1046_v40 = vld [vmem:[%s4283_s5 + $0x30] sm:$0xff]  ;;  %v1147_v55 = vand.u32 4294901760, %v1146_v53 }
  0x2a   :  { %2905 = vmatprep.subr.bf16.mxu0 %v4296_v3  ;;  %v1078_v42 = vand.u32 4294901760, %v1046_v40 }
  0x2b   :  { %v3438_v32 = vpack.c.bf16 %v1069_v31, %v1066_v30  ;;  %v3464_v46 = vsub.f32 %v1042_v28, %v1066_v30  ;;  %v3486_v61 = vpack.c.bf16 %v1154_v58, %v1147_v55  ;;  %v3527_v28 = vld [vmem:[%s4285_s7] sm:$0xff]  ;;  %v1645_v30 = vand.u32 4294901760, %v1600_v26  ;;  %v3532_v31 = vld [vmem:[%s4285_s7 + $0x10] sm:$0xff] }
  0x2c   :  { %v3474_v51 = vsub.f32 %v1046_v40, %v1078_v42  ;;  %v1643_v33 = vand.u32 4294901760, %v3527_v28  ;;  %v1647_v36 = vand.u32 4294901760, %v3532_v31  ;;  %v1649_v40 = vand.u32 4294901760, %v3538_v34 }
  0x2d   :  { %2907 = vmatpush3.bf16.msra.mxu0 %v2906_v41  ;;  %v1047_v41 = vld [vmem:[%s4283_s5 + $0x38] sm:$0xff] }
  0x2e   :  { %2908 = vmatprep.subr.bf16.mxu0 %v4296_v3  ;;  %v1081_v43 = vand.u32 4294901760, %v1047_v41  ;;  %v1187_v8 = vand.u32 4294901760, %v3474_v51  ;;  %v3563_v53 = vsub.f32 %v3527_v28, %v1643_v33  ;;  %v3567_v55 = vsub.f32 %v3532_v31, %v1647_v36 }
  0x30   :  { %2685 = vmatmul.mubr.f32.vlgmr.msra.gmra.mrb[0].mxu0 %v122_v19  ;;  %v3472_v50 = vpack.c.bf16 %v1081_v43, %v1078_v42  ;;  %v3476_v52 = vsub.f32 %v1047_v41, %v1081_v43  ;;  %v1653_v41 = vand.u32 4294901760, %v3543_v35  ;;  %v3551_v42 = vld [vmem:[%s4285_s7 + $0x20] sm:$0xff]  ;;  %v3556_v43 = vld [vmem:[%s4285_s7 + $0x30] sm:$0xff] }
  0x31   :  { %2910 = vmatpush3.bf16.msra.mxu0 %v2879_v11  ;;  %2695 = vmatprep.mubr.msk.f32.mxu0 %vm3287_vm1, %v4298_v9  ;;  %v2942_v11 = vpack.c.bf16 %v657_v1, %v650_v0  ;;  %v1173_v0 = vand.u32 4294901760, %v3468_v48  ;;  %v1180_v1 = vand.u32 4294901760, %v3470_v49  ;;  %v1651_v54 = vand.u32 4294901760, %v3551_v42 }
  0x32   :  { %2911 = vmatprep.subr.bf16.mxu0 %v4296_v3  ;;  %v4312_v58 = vand.u32 4294901760, %v3556_v43 }
  0x33   :  { %v1174_v4 = vsub.f32 %v3468_v48, %v1173_v0  ;;  %v1181_v5 = vsub.f32 %v3470_v49, %v1180_v1  ;;  %v3514_v23 = vpack.c.bf16 %v1180_v1, %v1173_v0  ;;  %v4288_v0 = vand.u32 4294901760, %v3567_v55 }
  0x35   :  { %2913 = vmatpush3.bf16.msra.mxu0 %v2882_v17  ;;  %v1182_v7 = vand.u32 4294901760, %v1181_v5  ;;  %v3594_v5 = vsub.f32 %v3556_v43, %v4312_v58 }
  0x36   :  { %2914 = vmatprep.subr.bf16.mxu0 %v4296_v3 }
  0x37   :  { %4381 = vst [vmem:[#allocation7_spill] sm:$0xff] %v3594_v5 }
  0x38   :  { %2696 = vmatmul.mubr.f32.vlgmr.msra.gmra.mrb[0].mxu0 %v122_v19 }
  0x39   :  { %2706 = vmatprep.mubr.msk.f32.mxu0 %vm3287_vm1, %v4298_v9  ;;  %2916 = vmatpush3.bf16.msra.mxu0 %v2915_v56 }
  0x3a   :  { %2917 = vmatprep.subr.bf16.mxu0 %v4296_v3 }
  0x3d   :  { %2919 = vmatpush3.bf16.msra.mxu0 %v2918_v59 }
  0x3e   :  { %2920 = vmatprep.subr.bf16.mxu0 %v4296_v3 }
 0x10b   :  { %v534_v13 = vpop.f32.mrb[0].mxu0 }
 0x10c   :  { %v3214_v14 = vadd.f32 %v2515_v12, %v534_v13  ;;  %v2697_v15 = vpop.f32.mrb[1].mxu0  ;;  %v1188_v12 = vsub.f32 %v3474_v51, %v1187_v8 }
 0x10e   :  { %v538_v16 = vmax.f32 %v3214_v14, 0.0  ;;  %v1189_v14 = vand.u32 4294901760, %v1188_v12  ;;  %v1770_v12 = vsub.f32 %v3567_v55, %v4288_v0 }
 0x110   :  { %v552_v17 = vsel %vm550_vm3, %v538_v16, 0 }
 0x111   :  { %v623_v18 = vand.u32 4294901760, %v552_v17 }
 0x113   :  { %v624_v19 = vsub.f32 %v552_v17, %v623_v18  ;;  %v3654_v17 = vpack.c.bf16 %v1645_v30, %v1641_v29 }
 0x115   :  { %v625_v20 = vand.u32 4294901760, %v624_v19  ;;  %2729 = vmatmul.mubr.f32.vlgmr.msra.gmra.mrb[0].mxu1 %v624_v19 }
 0x116   :  { %2934 = vmatpush3.bf16.msra.mxu1 %v2915_v56  ;;  %2739 = vmatprep.mubr.msk.f32.mxu1 %vm3287_vm1, %v4298_v9 }
 0x117   :  { %2935 = vmatprep.subr.bf16.mxu1 %v4296_v3  ;;  %v626_v21 = vsub.f32 %v624_v19, %v625_v20 }
 0x119   :  { %v627_v22 = vand.u32 4294901760, %v626_v21  ;;  %v3510_v21 = vpack.c.bf16 %v1152_v45, %v1145_v44  ;;  %v3558_v44 = vsub.f32 %v1598_v25, %v1641_v29  ;;  %v3560_v45 = vsub.f32 %v1600_v26, %v1645_v30  ;;  %v3619_v25 = vld [vmem:[%s4285_s7 + $0x48] sm:$0xff]  ;;  %v3624_v26 = vld [vmem:[%s4285_s7 + $0x58] sm:$0xff]  ;;  %v3671_v29 = vld [vmem:[%s4285_s7 + $0x60] sm:$0xff] }
 0x11a   :  { %2937 = vmatpush3.bf16.msra.mxu1 %v2918_v59 }
 0x11b   :  { %2707 = vmatmul.mubr.f32.vlgmr.msra.gmra.mrb[2].mxu0 %v627_v22  ;;  %2938 = vmatprep.subr.bf16.mxu1 %v4296_v3  ;;  %v4292_v60 = vand.u32 4294901760, %v3560_v45 }
 0x11c   :  { %2922 = vmatpush3.bf16.msra.mxu0 %v2921_v2  ;;  %2717 = vmatprep.mubr.msk.f32.mxu0 %vm3287_vm1, %v4298_v9 }
 0x11d   :  { %2740 = vmatmul.mubr.f32.vlgmr.msra.gmra.mrb[0].mxu1 %v625_v20  ;;  %2923 = vmatprep.subr.bf16.mxu0 %v4296_v3  ;;  %v3635_v20 = vld [vmem:[%s4285_s7 + $0x40] sm:$0xff] }
 0x11e   :  { %2940 = vmatpush3.bf16.msra.mxu1 %v2939_v6  ;;  %2750 = vmatprep.mubr.msk.f32.mxu1 %vm3287_vm1, %v4298_v9  ;;  %v1175_v6 = vand.u32 4294901760, %v1174_v4 }
 0x11f   :  { %2941 = vmatprep.subr.bf16.mxu1 %v4296_v3 }
 0x120   :  { %2925 = vmatpush3.bf16.msra.mxu0 %v2924_v10  ;;  %v1194_v10 = vand.u32 4294901760, %v3476_v52 }
 0x121   :  { %2950 = vmatprep.subr.bf16.mxu0 %v4296_v3 }
 0x122   :  { %2943 = vmatpush3.bf16.msra.mxu1 %v2942_v11  ;;  %v3496_v11 = vpack.c.bf16 %v1182_v7, %v1175_v6  ;;  %v1195_v13 = vsub.f32 %v3476_v52, %v1194_v10  ;;  %v3516_v24 = vpack.c.bf16 %v1194_v10, %v1187_v8  ;;  %v1764_v7 = vsub.f32 %v3560_v45, %v4292_v60 }
 0x123   :  { %2718 = vmatmul.mubr.f32.vlgmr.msra.gmra.mrb[2].mxu0 %v623_v18  ;;  %2944 = vmatprep.subr.bf16.mxu1 %v4296_v3 }
 0x124   :  { %2780 = vmatprep.mubr.msk.f32.mxu0 %vm3287_vm1, %v4298_v9  ;;  %2952 = vmatpush3.bf16.msra.mxu0 %v3428_v27  ;;  %v1196_v15 = vand.u32 4294901760, %v1195_v13  ;;  %v1765_v31 = vand.u32 4294901760, %v1764_v7 }
 0x125   :  { %2751 = vmatmul.mubr.f32.vlgmr.msra.gmra.mrb[0].mxu1 %v623_v18  ;;  %2953 = vmatprep.subr.bf16.mxu0 %v4296_v3 }
 0x126   :  { %2946 = vmatpush3.bf16.msra.mxu1 %v2915_v56  ;;  %2761 = vmatprep.mubr.msk.f32.mxu1 %vm3287_vm1, %v4298_v9  ;;  %v1159_v56 = vand.u32 4294901760, %v3464_v46  ;;  %v3500_v16 = vpack.c.bf16 %v1196_v15, %v1189_v14  ;;  %v4294_v15 = vand.u32 4294901760, %v3594_v5 }
 0x127   :  { %2947 = vmatprep.subr.bf16.mxu1 %v4296_v3 }
 0x128   :  { %2955 = vmatpush3.bf16.msra.mxu0 %v3438_v32  ;;  %v3512_v22 = vpack.c.bf16 %v1166_v57, %v1159_v56  ;;  %v3577_v57 = vsub.f32 %v3543_v35, %v1653_v41 }
 0x129   :  { %2956 = vmatprep.subr.bf16.mxu0 %v4296_v3 }
 0x12a   :  { %2949 = vmatpush3.bf16.msra.mxu1 %v2918_v59  ;;  %v1160_v59 = vsub.f32 %v3464_v46, %v1159_v56  ;;  %v3572_v56 = vsub.f32 %v3538_v34, %v1649_v40  ;;  %4379 = vst [vmem:[#allocation5_spill] sm:$0xff] %v3577_v57  ;;  %v4290_v4 = vand.u32 4294901760, %v3577_v57 }
 0x12c   :  { %2958 = vmatpush3.bf16.msra.mxu0 %v3452_v39  ;;  %v1161_v62 = vand.u32 4294901760, %v1160_v59  ;;  %v4293_v59 = vand.u32 4294901760, %v3558_v44  ;;  %v4289_v1 = vand.u32 4294901760, %v3572_v56  ;;  %v1788_v14 = vsub.f32 %v3577_v57, %v4290_v4  ;;  %v3906_v57 = vld [vmem:[%s4285_s7 + $0xc0] sm:$0xff] }
 0x12d   :  { %2762 = vmatmul.mubr.f32.vlgmr.msra.gmra.mrb[0].mxu1 %v623_v18  ;;  %2959 = vmatprep.subr.bf16.mxu0 %v4296_v3  ;;  %v1771_v4 = vand.u32 4294901760, %v1770_v12  ;;  %v4307_v12 = vand.u32 4294901760, %v3619_v25 }
 0x12e   :  { %1973 = vmatprep.mubr.f32.mxu1 %v4298_v9  ;;  %v3490_v2 = vpack.c.bf16 %v1168_v63, %v1161_v62  ;;  %v4291_v62 = vand.u32 4294901760, %v3563_v53  ;;  %v3586_v63 = vsub.f32 %v3551_v42, %v1651_v54  ;;  %v1752_v6 = vsub.f32 %v3558_v44, %v4293_v59  ;;  %v3776_v42 = vld [vmem:[%s4285_s7 + $0x90] sm:$0xff] }
 0x12f   :  { %v1776_v13 = vsub.f32 %v3572_v56, %v4289_v1  ;;  %v1789_v60 = vand.u32 4294901760, %v1788_v14  ;;  %v1794_v59 = vsub.f32 %v3594_v5, %v4294_v15  ;;  %v3647_v14 = vld [vmem:[%s4285_s7 + $0x68] sm:$0xff]  ;;  %v3652_v15 = vld [vmem:[%s4285_s7 + $0x78] sm:$0xff] }
 0x130   :  { %2961 = vmatpush3.bf16.msra.mxu0 %v3472_v50  ;;  %4380 = vst [vmem:[#allocation6_spill] sm:$0xff] %v3586_v63  ;;  %v1758_v8 = vsub.f32 %v3563_v53, %v4291_v62  ;;  %v4295_v10 = vand.u32 4294901760, %v3586_v63  ;;  %v1753_v28 = vand.u32 4294901760, %v1752_v6  ;;  %v3640_v6 = vld [vmem:[%s4285_s7 + $0x50] sm:$0xff] }
 0x131   :  { %2962 = vmatprep.subr.bf16.mxu0 %v4296_v3  ;;  %v1777_v62 = vand.u32 4294901760, %v1776_v13  ;;  %v4306_v13 = vand.u32 4294901760, %v3624_v26  ;;  %v1795_v18 = vand.u32 4294901760, %v1794_v59  ;;  %v4301_v3 = vand.u32 4294901760, %v3640_v6 }
 0x132   :  { %v1759_v0 = vand.u32 4294901760, %v1758_v8  ;;  %v1782_v1 = vsub.f32 %v3586_v63, %v4295_v10  ;;  %v3054_v7 = vpack.c.bf16 %v1765_v31, %v1753_v28  ;;  %v4304_v31 = vand.u32 4294901760, %v3635_v20 }
 0x133   :  { %v3058_v19 = vpack.c.bf16 %v1789_v60, %v1777_v62  ;;  %v3664_v28 = vsub.f32 %v3624_v26, %v4306_v13  ;;  %v3673_v59 = vpack.c.bf16 %v1647_v36, %v1643_v33  ;;  %v4300_v60 = vand.u32 4294901760, %v3647_v14  ;;  %v3692_v33 = vld [vmem:[%s4285_s7 + $0x70] sm:$0xff]  ;;  %v2516_v13 = vld [vmem:[%s4282_s4] ss:$0 sm:$0xff] }
 0x134   :  { %v1783_v8 = vand.u32 4294901760, %v1782_v1  ;;  %v3056_v10 = vpack.c.bf16 %v1771_v4, %v1759_v0  ;;  %3055 = vmatprep.subr.bf16.mxu1 %v3054_v7  ;;  %v3659_v1 = vsub.f32 %v3619_v25, %v4307_v12  ;;  %v4302_v62 = vand.u32 4294901760, %v3652_v15 }
 0x135   :  { %4383 = vst [vmem:[#allocation9_spill] sm:$0xff] %v3664_v28  ;;  %v4305_v4 = vand.u32 4294901760, %v3664_v28  ;;  %v3682_v7 = vsub.f32 %v3635_v20, %v4304_v31 }
 0x136   :  { %4382 = vst [vmem:[#allocation8_spill] sm:$0xff] %v3659_v1  ;;  %3057 = vmatpush1.bf16.msra.mxu1 %v3056_v10  ;;  %v3060_v30 = vpack.c.bf16 %v1795_v18, %v1783_v8  ;;  %v4303_v0 = vand.u32 4294901760, %v3659_v1  ;;  %v3687_v18 = vsub.f32 %v3640_v6, %v4301_v3  ;;  %v3702_v36 = vsub.f32 %v3652_v15, %v4302_v62 }
 0x137   :  { %3059 = vmatprep.subr.bf16.mxu1 %v3058_v19  ;;  %4384 = vst [vmem:[#allocation10_spill] sm:$0xff] %v3682_v7  ;;  %v3697_v19 = vsub.f32 %v3647_v14, %v4300_v60  ;;  %v3708_v10 = vpack.c.bf16 %v1653_v41, %v1649_v40  ;;  %v4311_v8 = vand.u32 4294901760, %v3671_v29  ;;  %v1812_v60 = vsub.f32 %v3664_v28, %v4305_v4 }
 0x138   :  { %4385 = vst [vmem:[#allocation11_spill] sm:$0xff] %v3687_v18  ;;  %4387 = vst [vmem:[#allocation13_spill] sm:$0xff] %v3702_v36  ;;  %v1800_v9 = vsub.f32 %v3659_v1, %v4303_v0  ;;  %v4308_v3 = vand.u32 4294901760, %v3682_v7  ;;  %v4309_v62 = vand.u32 4294901760, %v3687_v18  ;;  %v4313_v35 = vand.u32 4294901760, %v3702_v36 }
 0x139   :  { %4386 = vst [vmem:[#allocation12_spill] sm:$0xff] %v3697_v19  ;;  %v4310_v34 = vand.u32 4294901760, %v3697_v19  ;;  %v4316_v40 = vand.u32 4294901760, %v3692_v33  ;;  %v3725_v41 = vsub.f32 %v3671_v29, %v4311_v8  ;;  %v1813_v31 = vand.u32 4294901760, %v1812_v60 }
 0x13a   :  { %3061 = vmatpush1.bf16.msra.mxu1 %v3060_v30  ;;  %v1801_v0 = vand.u32 4294901760, %v1800_v9  ;;  %v1806_v4 = vsub.f32 %v3682_v7, %v4308_v3  ;;  %v1818_v30 = vsub.f32 %v3687_v18, %v4309_v62  ;;  %v1836_v9 = vsub.f32 %v3702_v36, %v4313_v35  ;;  %v3751_v62 = vld [vmem:[%s4285_s7 + $0x88] sm:$0xff] }
 0x13b   :  { %4388 = vst [vmem:[#allocation14_spill] sm:$0xff] %v3725_v41  ;;  %v1824_v12 = vsub.f32 %v3697_v19, %v4310_v34  ;;  %v3746_v3 = vsub.f32 %v3692_v33, %v4316_v40  ;;  %v3756_v34 = vld [vmem:[%s4285_s7 + $0x98] sm:$0xff]  ;;  %v4390_v60 = vand.u32 4294901760, %v3556_v43  ;;  %v4391_v7 = vand.u32 4294901760, %v3725_v41 }
 0x13c   :  { %v3062_v8 = vpack.c.bf16 %v1813_v31, %v1801_v0  ;;  %v1807_v58 = vand.u32 4294901760, %v1806_v4  ;;  %v1819_v35 = vand.u32 4294901760, %v1818_v30  ;;  %v1837_v18 = vand.u32 4294901760, %v1836_v9  ;;  %v3771_v31 = vld [vmem:[%s4285_s7 + $0x80] sm:$0xff]  ;;  %v3788_v30 = vld [vmem:[%s4285_s7 + $0xb8] sm:$0xff] }
 0x13d   :  { %4389 = vst [vmem:[#allocation15_spill] sm:$0xff] %v3746_v3  ;;  %v3762_v36 = vpack.c.bf16 %v4390_v60, %v1651_v54  ;;  %v1825_v19 = vand.u32 4294901760, %v1824_v12  ;;  %v1830_v28 = vsub.f32 %v3725_v41, %v4391_v7  ;;  %v4327_v1 = vand.u32 4294901760, %v3746_v3  ;;  %v3783_v7 = vld [vmem:[%s4285_s7 + $0xa8] sm:$0xff] }
 0x13e   :  { %3063 = vmatprep.subr.bf16.mxu1 %v3062_v8  ;;  %v3064_v12 = vpack.c.bf16 %v1819_v35, %v1807_v58  ;;  %v4329_v0 = vand.u32 4294901760, %v3751_v62  ;;  %v4328_v4 = vand.u32 4294901760, %v3756_v34  ;;  %v4393_v8 = vand.u32 4294901760, %v3624_v26 }
 0x13f   :  { %v3066_v9 = vpack.c.bf16 %v1837_v18, %v1825_v19  ;;  %v1831_v60 = vand.u32 4294901760, %v1830_v28  ;;  %v1842_v58 = vsub.f32 %v3746_v3, %v4327_v1  ;;  %v4331_v18 = vand.u32 4294901760, %v3771_v31 }
 0x140   :  { %3065 = vmatpush1.bf16.msra.mxu1 %v3064_v12  ;;  %v3807_v28 = vsub.f32 %v3756_v34, %v4328_v4  ;;  %v4330_v19 = vand.u32 4294901760, %v3776_v42  ;;  %v4396_v26 = vand.u32 4294901760, %v3635_v20 }
 0x141   :  { %3067 = vmatprep.subr.bf16.mxu1 %v3066_v9  ;;  %v3839_v9 = vld [vmem:[%s4285_s7 + $0xb0] sm:$0xff] }
 0x142   :  { %4395 = vst [vmem:[#allocation17_spill] sm:$0xff] %v3807_v28  ;;  %v3829_v20 = vsub.f32 %v3776_v42, %v4330_v19  ;;  %v4402_v19 = vand.u32 4294901760, %v3647_v14 }
 0x144   :  { %4399 = vst [vmem:[#allocation19_spill] sm:$0xff] %v3829_v20  ;;  %v4344_v41 = vand.u32 4294901760, %v3829_v20 }
 0x1f6   :  { %v720_v40 = vpop.f32.mrb[2].mxu0 }
 0x1f7   :  { %v3215_v43 = vadd.f32 %v2516_v13, %v720_v40  ;;  %v2719_v54 = vpop.f32.mrb[3].mxu0  ;;  %v4392_v13 = vand.u32 4294901760, %v3619_v25  ;;  %v3802_v40 = vsub.f32 %v3751_v62, %v4329_v0  ;;  %v1843_v25 = vand.u32 4294901760, %v1842_v58 }
 0x1f8   :  { %v4397_v54 = vand.u32 4294901760, %v3640_v6  ;;  %v3824_v0 = vsub.f32 %v3771_v31, %v4331_v18  ;;  %v3834_v6 = vld [vmem:[%s4285_s7 + $0xa0] sm:$0xff]  ;;  %v4403_v18 = vand.u32 4294901760, %v3652_v15 }
 0x1f9   :  { %v3797_v35 = vpack.c.bf16 %v4393_v8, %v4392_v13  ;;  %4394 = vst [vmem:[#allocation16_spill] sm:$0xff] %v3802_v40  ;;  %v4332_v13 = vand.u32 4294901760, %v3783_v7  ;;  %v4337_v8 = vand.u32 4294901760, %v3788_v30  ;;  %v4340_v1 = vand.u32 4294901760, %v3802_v40 }
 0x1fa   :  { %v3815_v12 = vpack.c.bf16 %v4397_v54, %v4396_v26  ;;  %4398 = vst [vmem:[#allocation18_spill] sm:$0xff] %v3824_v0  ;;  %v3068_v58 = vpack.c.bf16 %v1843_v25, %v1831_v60  ;;  %v3855_v4 = vpack.c.bf16 %v4403_v18, %v4402_v19  ;;  %v4404_v25 = vand.u32 4294901760, %v3807_v28 }
 0x1fb   :  { %v3844_v26 = vsub.f32 %v3783_v7, %v4332_v13  ;;  %v3849_v54 = vsub.f32 %v3788_v30, %v4337_v8  ;;  %v1848_v60 = vsub.f32 %v3802_v40, %v4340_v1  ;;  %v4343_v3 = vand.u32 4294901760, %v3824_v0 }
 0x1fc   :  { %v1860_v13 = vsub.f32 %v3807_v28, %v4404_v25  ;;  %3069 = vmatpush1.bf16.msra.mxu1 %v3068_v58  ;;  %v4357_v18 = vand.u32 4294901760, %v3839_v9  ;;  %v1866_v25 = vsub.f32 %v3829_v20, %v4344_v41  ;;  %v3894_v41 = vld [vmem:[%s4285_s7 + $0xc8] sm:$0xff] }
 0x1fd   :  { %4400 = vst [vmem:[#allocation20_spill] sm:$0xff] %v3844_v26  ;;  %4401 = vst [vmem:[#allocation21_spill] sm:$0xff] %v3849_v54  ;;  %v4345_v8 = vand.u32 4294901760, %v3844_v26  ;;  %v4352_v14 = vand.u32 4294901760, %v3849_v54  ;;  %v1849_v19 = vand.u32 4294901760, %v1848_v60  ;;  %v1854_v1 = vsub.f32 %v3824_v0, %v4343_v3 }
 0x1fe   :  { %v1861_v5 = vand.u32 4294901760, %v1860_v13  ;;  %v4405_v60 = vand.u32 4294901760, %v3834_v6  ;;  %v3889_v3 = vsub.f32 %v3839_v9, %v4357_v18 }
 0x1ff   :  { %v1872_v58 = vsub.f32 %v3844_v26, %v4345_v8  ;;  %v1884_v15 = vsub.f32 %v3849_v54, %v4352_v14  ;;  %v1855_v0 = vand.u32 4294901760, %v1854_v1  ;;  %v1867_v14 = vand.u32 4294901760, %v1866_v25 }
 0x200   :  { %v1035_v28 = vpop.f32.mrb[0].mxu1  ;;  %v3884_v13 = vsub.f32 %v3834_v6, %v4405_v60  ;;  %4407 = vst [vmem:[#allocation23_spill] sm:$0xff] %v3889_v3  ;;  %v3070_v20 = vpack.c.bf16 %v1861_v5, %v1849_v19  ;;  %v3899_v60 = vld [vmem:[%s4285_s7 + $0xd8] sm:$0xff]  ;;  %v4362_v63 = vand.u32 4294901760, %v3889_v3  ;;  %v4408_v1 = vand.u32 4294901760, %v3671_v29  ;;  %v3925_v29 = vld [vmem:[%s4285_s7 + $0xd0] sm:$0xff] }
 0x201   :  { %v3216_v8 = vadd.f32 %v3215_v43, %v1035_v28  ;;  %v2763_v26 = vpop.f32.mrb[1].mxu1  ;;  %v1873_v54 = vand.u32 4294901760, %v1872_v58  ;;  %v1885_v40 = vand.u32 4294901760, %v1884_v15  ;;  %v3072_v5 = vpack.c.bf16 %v1867_v14, %v1855_v0 }
 0x202   :  { %4406 = vst [vmem:[#allocation22_spill] sm:$0xff] %v3884_v13  ;;  %v4363_v18 = vand.u32 4294901760, %v3884_v13  ;;  %3071 = vmatprep.subr.bf16.mxu1 %v3070_v20  ;;  %v4409_v28 = vand.u32 4294901760, %v3692_v33  ;;  %v4367_v15 = vand.u32 4294901760, %v3894_v41  ;;  %v1890_v58 = vsub.f32 %v3889_v3, %v4362_v63 }
 0x203   :  { %v1039_v43 = vmax.f32 %v3216_v8, 0.0  ;;  %v3074_v19 = vpack.c.bf16 %v1885_v40, %v1873_v54  ;;  %v4364_v8 = vand.u32 4294901760, %v3899_v60  ;;  %3073 = vmatpush1.bf16.msra.mxu1 %v3072_v5  ;;  %v4411_v40 = vand.u32 4294901760, %v3751_v62 }
 0x204   :  { %v3912_v26 = vpack.c.bf16 %v4409_v28, %v4408_v1  ;;  %v1878_v25 = vsub.f32 %v3884_v13, %v4363_v18  ;;  %v3931_v0 = vsub.f32 %v3894_v41, %v4367_v15  ;;  %v4412_v20 = vand.u32 4294901760, %v3756_v34 }
 0x205   :  { %v1057_v33 = vsel %vm1055_vm4, %v1039_v43, 0  ;;  %v4366_v14 = vand.u32 4294901760, %v3906_v57  ;;  %3075 = vmatprep.subr.bf16.mxu1 %v3074_v19  ;;  %v1891_v63 = vand.u32 4294901760, %v1890_v58  ;;  %v3945_v43 = vsub.f32 %v3899_v60, %v4364_v8 }
 0x206   :  { %4410 = vst [vmem:[#allocation24_spill] sm:$0xff] %v3931_v0  ;;  %v3937_v54 = vpack.c.bf16 %v4412_v20, %v4411_v40  ;;  %v3940_v1 = vand.u32 4294901760, %v1057_v33  ;;  %v1879_v28 = vand.u32 4294901760, %v1878_v25  ;;  %v4365_v5 = vand.u32 4294901760, %v3931_v0 }
 0x207   :  { %v4370_v62 = vand.u32 4294901760, %v3925_v29  ;;  %v3952_v34 = vsub.f32 %v3906_v57, %v4366_v14  ;;  %v4376_v19 = vand.u32 4294901760, %v3945_v43 }
 0x208   :  { %v1133_v40 = vsub.f32 %v1057_v33, %v3940_v1  ;;  %v3076_v20 = vpack.c.bf16 %v1891_v63, %v1879_v28  ;;  %v1896_v25 = vsub.f32 %v3931_v0, %v4365_v5 }
 0x209   :  { %v4375_v58 = vand.u32 4294901760, %v3952_v34  ;;  %v3963_v18 = vsub.f32 %v3925_v29, %v4370_v62  ;;  %v1908_v33 = vsub.f32 %v3945_v43, %v4376_v19  ;;  %v4414_v19 = vmov 0.0|0.0  }
 0x20a   :  { %v1134_v8 = vand.u32 4294901760, %v1133_v40  ;;  %3077 = vmatpush1.bf16.msra.mxu1 %v3076_v20  ;;  %v1897_v63 = vand.u32 4294901760, %v1896_v25  ;;  %v4413_v25 = vmov 0.0  }
 0x20b   :  { %v1902_v28 = vsub.f32 %v3952_v34, %v4375_v58  ;;  %v1913_v5 = vand.u32 4294901760, %v3963_v18  ;;  %v1909_v15 = vand.u32 4294901760, %v1908_v33 }
 0x20c   :  { %v1135_v14 = vsub.f32 %v1133_v40, %v1134_v8 }
 0x20d   :  { %v1903_v0 = vand.u32 4294901760, %v1902_v28  ;;  %v1914_v62 = vsub.f32 %v3963_v18, %v1913_v5  ;;  %v3078_v20 = vpack.c.bf16 %v1909_v15, %v1897_v63  ;;  %v4421_v63 = vand.u32 4294901760, %v3783_v7 }
 0x20e   :  { %v1136_v3 = vand.u32 4294901760, %v1135_v14  ;;  %v4420_v14 = vand.u32 4294901760, %v3776_v42  ;;  %v4422_v28 = vand.u32 4294901760, %v3788_v30  ;;  %v4424_v42 = vand.u32 4294901760, %v3839_v9 }
 0x20f   :  { %v1915_v13 = vand.u32 4294901760, %v1914_v62  ;;  %3079 = vmatprep.subr.bf16.mxu1 %v3078_v20  ;;  %v3086_v7 = vpack.c.bf16 %v3560_v45, %v3558_v44  ;;  %v4425_v30 = vand.u32 4294901760, %v3894_v41  ;;  %v4428_v9 = vand.u32 4294901760, %v3925_v29 }
 0x210   :  { %2781 = vmatmul.mubr.f32.vlgmr.msra.gmra.mrb[4].mxu0 %v1136_v3  ;;  %v4415_v3 = vpack.c.bf16 %v3450_v38, %v3448_v37  ;;  %v4418_v37 = vpack.c.bf16 %v3476_v52, %v3474_v51  ;;  %v4092_v20 = vpack.c.bf16 %v4422_v28, %v4421_v63  ;;  %v4434_v63 = vld [vmem:[#allocation10_spill] sm:$0xff]  ;;  %v4435_v28 = vld [vmem:[#allocation11_spill] sm:$0xff] }
 0x211   :  { %2964 = vmatpush3.bf16.msra.mxu0 %v3486_v61  ;;  %2799 = vmatprep.mubr.msk.f32.mxu0 %vm3287_vm1, %v4413_v25  ;;  %v3080_v58 = vpack.c.bf16 %v1915_v13, %v1903_v0  ;;  %v4416_v61 = vpack.c.bf16 %v3466_v47, %v3464_v46  ;;  %v1625_v46 = vld [vmem:[%s4285_s7 + $0xe0] sm:$0xff]  ;;  %v1627_v47 = vld [vmem:[%s4285_s7 + $0xf0] sm:$0xff]  ;;  %v4419_v0 = vand.u32 4294901760, %v3771_v31  ;;  %v4423_v31 = vand.u32 4294901760, %v3834_v6 }
 0x212   :  { %2965 = vmatprep.subr.bf16.mxu0 %v4414_v19  ;;  %v4427_v6 = vand.u32 4294901760, %v3906_v57 }
 0x213   :  { %3081 = vmatpush1.bf16.msra.mxu1 %v3080_v58 }
 0x215   :  { %2967 = vmatpush3.bf16.msra.mxu0 %v3490_v2  ;;  %v4417_v2 = vpack.c.bf16 %v3470_v49, %v3468_v48  ;;  %v1699_v48 = vand.u32 4294901760, %v1625_v46  ;;  %v1703_v49 = vand.u32 4294901760, %v1627_v47 }
 0x216   :  { %2968 = vmatprep.subr.bf16.mxu0 %v4414_v19 }
 0x217   :  { %v4061_v52 = vsub.f32 %v1625_v46, %v1699_v48  ;;  %v4120_v46 = vpack.c.bf16 %v1703_v49, %v1699_v48  ;;  %v3088_v48 = vpack.c.bf16 %v3567_v55, %v3563_v53 }
 0x219   :  { %2970 = vmatpush3.bf16.msra.mxu0 %v3496_v11  ;;  %v4063_v11 = vsub.f32 %v1627_v47, %v1703_v49 }
 0x21a   :  { %2971 = vmatprep.subr.bf16.mxu0 %v4414_v19 }
 0x21b   :  { %v3116_v57 = vpack.c.bf16 %v4063_v11, %v4061_v52 }
 0x21d   :  { %2973 = vmatpush3.bf16.msra.mxu0 %v3500_v16 }
 0x21e   :  { %2974 = vmatprep.subr.bf16.mxu0 %v4414_v19 }
 0x220   :  { %2800 = vmatmul.mubr.f32.vlgmr.msra.gmra.mrb[4].mxu0 %v3940_v1 }
 0x221   :  { %2976 = vmatpush3.bf16.msra.mxu0 %v4415_v3  ;;  %2818 = vmatprep.mubr.msk.f32.mxu0 %vm3287_vm1, %v4413_v25 }
 0x222   :  { %2977 = vmatprep.subr.bf16.mxu0 %v4414_v19 }
 0x225   :  { %2979 = vmatpush3.bf16.msra.mxu0 %v4416_v61  ;;  %v4098_v61 = vpack.c.bf16 %v4424_v42, %v4423_v31  ;;  %v4436_v42 = vld [vmem:[#allocation12_spill] sm:$0xff] }
 0x226   :  { %2980 = vmatprep.subr.bf16.mxu0 %v4414_v19 }
 0x229   :  { %2982 = vmatpush3.bf16.msra.mxu0 %v4417_v2  ;;  %v4426_v2 = vand.u32 4294901760, %v3899_v60  ;;  %v2517_v60 = vld [vmem:[%s4284_s6] ss:$0 sm:$0xff] }
 0x22a   :  { %2983 = vmatprep.subr.bf16.mxu0 %v4414_v19 }
 0x22d   :  { %2985 = vmatpush3.bf16.msra.mxu0 %v4418_v37  ;;  %v4108_v37 = vpack.c.bf16 %v4426_v2, %v4425_v30  ;;  %v4438_v2 = vld [vmem:[#allocation14_spill] sm:$0xff] }
 0x22e   :  { %2986 = vmatprep.subr.bf16.mxu0 %v4414_v19 }
 0x230   :  { %2819 = vmatmul.mubr.f32.vlgmr.msra.gmra.mrb[4].mxu0 %v1133_v40 }
 0x231   :  { %2988 = vmatpush3.bf16.msra.mxu0 %v3428_v27  ;;  %2837 = vmatprep.mubr.msk.f32.mxu0 %vm3287_vm1, %v4413_v25 }
 0x232   :  { %2989 = vmatprep.subr.bf16.mxu0 %v4414_v19 }
 0x235   :  { %2991 = vmatpush3.bf16.msra.mxu0 %v3438_v32 }
 0x236   :  { %2992 = vmatprep.subr.bf16.mxu0 %v4414_v19 }
 0x239   :  { %2994 = vmatpush3.bf16.msra.mxu0 %v3452_v39 }
 0x23a   :  { %2995 = vmatprep.subr.bf16.mxu0 %v4414_v19 }
 0x23d   :  { %2997 = vmatpush3.bf16.msra.mxu0 %v3472_v50 }
 0x23e   :  { %2998 = vmatprep.subr.bf16.mxu0 %v4414_v19 }
 0x240   :  { %2838 = vmatmul.mubr.f32.vlgmr.msra.gmra.mrb[4].mxu0 %v1134_v8 }
 0x241   :  { %3000 = vmatpush3.bf16.msra.mxu0 %v3510_v21  ;;  %2856 = vmatprep.mubr.msk.f32.mxu0 %vm3287_vm1, %v4413_v25 }
 0x242   :  { %3001 = vmatprep.subr.bf16.mxu0 %v4414_v19 }
 0x245   :  { %3003 = vmatpush3.bf16.msra.mxu0 %v3512_v22  ;;  %v4378_v22 = vand.u32 4294901760, %v4061_v52 }
 0x246   :  { %3004 = vmatprep.subr.bf16.mxu0 %v4414_v19 }
 0x247   :  { %v1926_v15 = vsub.f32 %v4061_v52, %v4378_v22 }
 0x249   :  { %3006 = vmatpush3.bf16.msra.mxu0 %v3514_v23  ;;  %v4377_v23 = vand.u32 4294901760, %v4063_v11 }
 0x24a   :  { %3007 = vmatprep.subr.bf16.mxu0 %v4414_v19 }
 0x24b   :  { %v1938_v8 = vsub.f32 %v4063_v11, %v4377_v23  ;;  %v4447_v23 = vld [vmem:[#allocation23_spill] sm:$0xff] }
 0x24d   :  { %3009 = vmatpush3.bf16.msra.mxu0 %v3516_v24  ;;  %v1939_v58 = vand.u32 4294901760, %v1938_v8  ;;  %v4430_v8 = vld [vmem:[#allocation6_spill] sm:$0xff] }
 0x24e   :  { %3010 = vmatprep.subr.bf16.mxu0 %v4414_v19 }
 0x250   :  { %2857 = vmatmul.mubr.f32.vlgmr.msra.gmra.mrb[4].mxu0 %v3940_v1 }
 0x251   :  { %3012 = vmatpush3.bf16.msra.mxu0 %v3428_v27  ;;  %2875 = vmatprep.mubr.msk.f32.mxu0 %vm3287_vm1, %v4413_v25  ;;  %v1626_v27 = vld [vmem:[%s4285_s7 + $0xe8] sm:$0xff] }
 0x252   :  { %3013 = vmatprep.subr.bf16.mxu0 %v4414_v19  ;;  %v1697_v38 = vand.u32 4294901760, %v1626_v27 }
 0x255   :  { %3015 = vmatpush3.bf16.msra.mxu0 %v3438_v32  ;;  %v1628_v32 = vld [vmem:[%s4285_s7 + $0xf8] sm:$0xff] }
 0x256   :  { %3016 = vmatprep.subr.bf16.mxu0 %v4414_v19 }
 0x259   :  { %3018 = vmatpush3.bf16.msra.mxu0 %v3452_v39  ;;  %v1701_v39 = vand.u32 4294901760, %v1628_v32 }
 0x25a   :  { %3019 = vmatprep.subr.bf16.mxu0 %v4414_v19  ;;  %v1927_v19 = vand.u32 4294901760, %v1926_v15 }
 0x25b   :  { %v4059_v51 = vsub.f32 %v1628_v32, %v1701_v39  ;;  %v4118_v32 = vpack.c.bf16 %v1701_v39, %v1697_v38 }
 0x25c   :  { %v3084_v3 = vpack.c.bf16 %v1939_v58, %v1927_v19  ;;  %v4433_v19 = vld [vmem:[#allocation9_spill] sm:$0xff] }
 0x25d   :  { %3021 = vmatpush3.bf16.msra.mxu0 %v3472_v50  ;;  %v4057_v50 = vsub.f32 %v1626_v27, %v1697_v38  ;;  %v1931_v21 = vand.u32 4294901760, %v4059_v51  ;;  %v4115_v27 = vpack.c.bf16 %v4428_v9, %v4427_v6  ;;  %v4439_v6 = vld [vmem:[#allocation15_spill] sm:$0xff] }
 0x25e   :  { %3023 = vmatprep.subr.bf16.mxu0 %v3654_v17  ;;  %v3100_v9 = vpack.c.bf16 %v4439_v6, %v4438_v2 }
 0x25f   :  { %v1919_v16 = vand.u32 4294901760, %v4057_v50  ;;  %v1932_v13 = vsub.f32 %v4059_v51, %v1931_v21  ;;  %v3114_v41 = vpack.c.bf16 %v4059_v51, %v4057_v50 }
 0x260   :  { %2876 = vmatmul.mubr.f32.vlgmr.msra.gmra.mrb[4].mxu0 %v3940_v1  ;;  %v4085_v1 = vpack.c.bf16 %v4420_v14, %v4419_v0  ;;  %v4431_v0 = vld [vmem:[#allocation7_spill] sm:$0xff] }
 0x261   :  { %3025 = vmatpush1.bf16.msra.mxu0 %v3673_v59  ;;  %1737 = vmatprep.mubr.f32.mxu0 %v4413_v25  ;;  %v1920_v24 = vsub.f32 %v4057_v50, %v1919_v16  ;;  %v1933_v40 = vand.u32 4294901760, %v1932_v13  ;;  %v3092_v14 = vpack.c.bf16 %v4431_v0, %v4430_v8 }
 0x262   :  { %3027 = vmatprep.subr.bf16.mxu0 %v3708_v10 }
 0x263   :  { %v1921_v62 = vand.u32 4294901760, %v1920_v24  ;;  %v4429_v24 = vld [vmem:[#allocation5_spill] sm:$0xff] }
 0x264   :  { %v3090_v13 = vpack.c.bf16 %v4429_v24, %v3572_v56 }
 0x265   :  { %3029 = vmatpush1.bf16.msra.mxu0 %v3762_v36  ;;  %v3082_v33 = vpack.c.bf16 %v1933_v40, %v1921_v62  ;;  %v4432_v40 = vld [vmem:[#allocation8_spill] sm:$0xff] }
 0x266   :  { %3031 = vmatprep.subr.bf16.mxu0 %v3797_v35  ;;  %v3094_v58 = vpack.c.bf16 %v4433_v19, %v4432_v40 }
 0x267   :  { %3083 = vmatprep.subr.bf16.mxu1 %v3082_v33 }
 0x268   :  { %3085 = vmatpush1.bf16.msra.mxu1 %v3084_v3  ;;  %v3096_v3 = vpack.c.bf16 %v4435_v28, %v4434_v63 }
 0x269   :  { %3033 = vmatpush1.bf16.msra.mxu0 %v3815_v12  ;;  %3087 = vmatprep.subr.bf16.mxu1 %v3086_v7  ;;  %v4437_v7 = vld [vmem:[#allocation13_spill] sm:$0xff] }
 0x26a   :  { %3035 = vmatprep.subr.bf16.mxu0 %v3855_v4  ;;  %v3098_v30 = vpack.c.bf16 %v4437_v7, %v4436_v42 }
 0x26d   :  { %3037 = vmatpush1.bf16.msra.mxu0 %v3912_v26 }
 0x26e   :  { %3039 = vmatprep.subr.bf16.mxu0 %v3937_v54 }
 0x271   :  { %3041 = vmatpush1.bf16.msra.mxu0 %v4085_v1 }
 0x272   :  { %3043 = vmatprep.subr.bf16.mxu0 %v4092_v20 }
 0x275   :  { %3045 = vmatpush1.bf16.msra.mxu0 %v4098_v61 }
 0x276   :  { %3047 = vmatprep.subr.bf16.mxu0 %v4108_v37 }
 0x279   :  { %3049 = vmatpush1.bf16.msra.mxu0 %v4115_v27 }
 0x27a   :  { %3051 = vmatprep.subr.bf16.mxu0 %v4118_v32 }
 0x27d   :  { %3053 = vmatpush1.bf16.msra.mxu0 %v4120_v46 }
 0x333   :  { %v1592_v29 = vpop.f32.mrb[4].mxu0 }
 0x334   :  { %v3217_v47 = vadd.f32 %v2517_v60, %v1592_v29  ;;  %v2877_v38 = vpop.f32.mrb[5].mxu0  ;;  %v4440_v60 = vld [vmem:[#allocation16_spill] sm:$0xff]  ;;  %v4441_v29 = vld [vmem:[#allocation17_spill] sm:$0xff] }
 0x335   :  { %v4442_v38 = vld [vmem:[#allocation18_spill] sm:$0xff] }
 0x336   :  { %v1596_v39 = vmax.f32 %v3217_v47, 0.0  ;;  %v3102_v47 = vpack.c.bf16 %v4441_v29, %v4440_v60 }
 0x338   :  { %v4133_v49 = vand.u32 4294901760, %v1596_v39 }
 0x33a   :  { %v1739_v15 = vsub.f32 %v1596_v39, %v4133_v49  ;;  %1975 = vmatmul.mubr.f32.vlgmr.msra.gmra.mrb[2].mxu1 %v4133_v49  ;;  %v4443_v39 = vld [vmem:[#allocation19_spill] sm:$0xff] }
 0x33b   :  { %3089 = vmatpush1.bf16.msra.mxu1 %v3088_v48  ;;  %2109 = vmatprep.mubr.f32.mxu1 %v4413_v25  ;;  %v3104_v48 = vpack.c.bf16 %v4443_v39, %v4442_v38 }
 0x33c   :  { %v1740_v62 = vand.u32 4294901760, %v1739_v15  ;;  %3091 = vmatprep.subr.bf16.mxu1 %v3090_v13  ;;  %v4444_v13 = vld [vmem:[#allocation20_spill] sm:$0xff] }
 0x33e   :  { %v1741_v33 = vsub.f32 %v1739_v15, %v1740_v62 }
 0x33f   :  { %3093 = vmatpush1.bf16.msra.mxu1 %v3092_v14  ;;  %v4445_v14 = vld [vmem:[#allocation21_spill] sm:$0xff] }
 0x340   :  { %3095 = vmatprep.subr.bf16.mxu1 %v3094_v58  ;;  %v1742_v31 = vand.u32 4294901760, %v1741_v33  ;;  %v3106_v58 = vpack.c.bf16 %v4445_v14, %v4444_v13  ;;  %v4446_v33 = vld [vmem:[#allocation22_spill] sm:$0xff] }
 0x342   :  { %1743 = vmatmul.mubr.f32.vlgmr.msra.gmra.mrb[6].mxu0 %v1742_v31  ;;  %v3108_v31 = vpack.c.bf16 %v4447_v23, %v4446_v33 }
 0x343   :  { %3097 = vmatpush1.bf16.msra.mxu1 %v3096_v3  ;;  %v4448_v3 = vld [vmem:[#allocation24_spill] sm:$0xff] }
 0x344   :  { %3099 = vmatprep.subr.bf16.mxu1 %v3098_v30  ;;  %v3110_v22 = vpack.c.bf16 %v3945_v43, %v4448_v3  ;;  %v3112_v30 = vpack.c.bf16 %v3963_v18, %v3952_v34 }
 0x347   :  { %3101 = vmatpush1.bf16.msra.mxu1 %v3100_v9  ;;  %v4452_v9 = vand.u32 4294901760, %v3567_v55  ;;  %v4458_v55 = vand.u32 4294901760, %v4433_v19  ;;  %v4465_v19 = vand.u32 4294901760, %v4440_v60  ;;  %v4472_v60 = vand.u32 4294901760, %v4447_v23 }
 0x348   :  { %3103 = vmatprep.subr.bf16.mxu1 %v3102_v47  ;;  %v4476_v23 = vand.u32 4294901760, %v4061_v52 }
 0x34b   :  { %3105 = vmatpush1.bf16.msra.mxu1 %v3104_v48  ;;  %v4453_v48 = vand.u32 4294901760, %v3572_v56  ;;  %v4459_v56 = vand.u32 4294901760, %v4434_v63  ;;  %v4466_v63 = vand.u32 4294901760, %v4441_v29  ;;  %v4473_v29 = vand.u32 4294901760, %v4448_v3 }
 0x34c   :  { %3107 = vmatprep.subr.bf16.mxu1 %v3106_v58  ;;  %v4454_v58 = vand.u32 4294901760, %v4429_v24  ;;  %v4460_v24 = vand.u32 4294901760, %v4435_v28  ;;  %v4467_v28 = vand.u32 4294901760, %v4442_v38  ;;  %v4474_v38 = vand.u32 4294901760, %v3945_v43 }
 0x34f   :  { %3109 = vmatpush1.bf16.msra.mxu1 %v3108_v31  ;;  %v3154_v31 = vpack.c.bf16 %v4454_v58, %v4453_v48 }
 0x350   :  { %3111 = vmatprep.subr.bf16.mxu1 %v3110_v22  ;;  %v4449_v22 = vand.u32 4294901760, %v3558_v44  ;;  %v4455_v44 = vand.u32 4294901760, %v4430_v8  ;;  %v4461_v8 = vand.u32 4294901760, %v4436_v42  ;;  %v4468_v42 = vand.u32 4294901760, %v4443_v39 }
 0x351   :  { %v4475_v39 = vand.u32 4294901760, %v3952_v34 }
 0x353   :  { %3113 = vmatpush1.bf16.msra.mxu1 %v3112_v30 }
 0x354   :  { %3115 = vmatprep.subr.bf16.mxu1 %v3114_v41  ;;  %v4450_v41 = vand.u32 4294901760, %v3560_v45  ;;  %v4456_v45 = vand.u32 4294901760, %v4431_v0  ;;  %v4462_v0 = vand.u32 4294901760, %v4437_v7  ;;  %v4469_v7 = vand.u32 4294901760, %v4444_v13 }
 0x355   :  { %v3176_v13 = vpack.c.bf16 %v1913_v5, %v4475_v39 }
 0x356   :  { %v3156_v30 = vpack.c.bf16 %v4456_v45, %v4455_v44 }
 0x357   :  { %3117 = vmatpush1.bf16.msra.mxu1 %v3116_v57  ;;  %v3150_v57 = vpack.c.bf16 %v4450_v41, %v4449_v22  ;;  %v3162_v41 = vpack.c.bf16 %v4462_v0, %v4461_v8 }
 0x358   :  { %3119 = vmatprep.subr.bf16.mxu1 %v3654_v17 }
 0x35a   :  { %2112 = vmatmul.mubr.f32.vlgmr.msra.gmra.mrb[2].mxu1 %v1739_v15  ;;  %v4451_v15 = vand.u32 4294901760, %v3563_v53  ;;  %v4457_v53 = vand.u32 4294901760, %v4432_v40  ;;  %v4464_v40 = vand.u32 4294901760, %v4439_v6  ;;  %v4471_v6 = vand.u32 4294901760, %v4446_v33 }
 0x35b   :  { %3121 = vmatpush1.bf16.msra.mxu1 %v3673_v59  ;;  %2214 = vmatprep.mubr.f32.mxu1 %v4413_v25  ;;  %v4477_v33 = vand.u32 4294901760, %v4063_v11 }
 0x35c   :  { %3123 = vmatprep.subr.bf16.mxu1 %v3708_v10  ;;  %v3152_v47 = vpack.c.bf16 %v4452_v9, %v4451_v15  ;;  %v3158_v22 = vpack.c.bf16 %v4458_v55, %v4457_v53  ;;  %v3166_v9 = vpack.c.bf16 %v4466_v63, %v4465_v19  ;;  %v3172_v58 = vpack.c.bf16 %v4472_v60, %v4471_v6 }
 0x35d   :  { %v3180_v3 = vpack.c.bf16 %v4477_v33, %v4476_v23 }
 0x35f   :  { %3125 = vmatpush1.bf16.msra.mxu1 %v3762_v36 }
 0x360   :  { %3127 = vmatprep.subr.bf16.mxu1 %v3797_v35 }
 0x363   :  { %3129 = vmatpush1.bf16.msra.mxu1 %v3815_v12 }
 0x364   :  { %3131 = vmatprep.subr.bf16.mxu1 %v3855_v4 }
 0x367   :  { %3133 = vmatpush1.bf16.msra.mxu1 %v3912_v26 }
 0x368   :  { %3135 = vmatprep.subr.bf16.mxu1 %v3937_v54 }
 0x36b   :  { %3137 = vmatpush1.bf16.msra.mxu1 %v4085_v1 }
 0x36c   :  { %3139 = vmatprep.subr.bf16.mxu1 %v4092_v20 }
 0x36f   :  { %3141 = vmatpush1.bf16.msra.mxu1 %v4098_v61 }
 0x370   :  { %3143 = vmatprep.subr.bf16.mxu1 %v4108_v37 }
 0x373   :  { %3145 = vmatpush1.bf16.msra.mxu1 %v4115_v27 }
 0x374   :  { %3147 = vmatprep.subr.bf16.mxu1 %v4118_v32 }
 0x377   :  { %3149 = vmatpush1.bf16.msra.mxu1 %v4120_v46 }
 0x378   :  { %3151 = vmatprep.subr.bf16.mxu1 %v3150_v57  ;;  %v4463_v57 = vand.u32 4294901760, %v4438_v2  ;;  %v4470_v2 = vand.u32 4294901760, %v4445_v14  ;;  %v3178_v14 = vpack.c.bf16 %v1931_v21, %v1919_v16 }
 0x37a   :  { %2218 = vmatmul.mubr.f32.vlgmr.msra.gmra.mrb[2].mxu1 %v1740_v62  ;;  %v3160_v62 = vpack.c.bf16 %v4460_v24, %v4459_v56  ;;  %v3164_v15 = vpack.c.bf16 %v4464_v40, %v4463_v57  ;;  %v3170_v48 = vpack.c.bf16 %v4470_v2, %v4469_v7 }
 0x37b   :  { %3153 = vmatpush1.bf16.msra.mxu1 %v3152_v47  ;;  %2384 = vmatprep.mubr.f32.mxu1 %v4413_v25  ;;  %v3168_v47 = vpack.c.bf16 %v4468_v42, %v4467_v28 }
 0x37c   :  { %3155 = vmatprep.subr.bf16.mxu1 %v3154_v31  ;;  %v3174_v31 = vpack.c.bf16 %v4474_v38, %v4473_v29 }
 0x37f   :  { %3157 = vmatpush1.bf16.msra.mxu1 %v3156_v30 }
 0x380   :  { %3159 = vmatprep.subr.bf16.mxu1 %v3158_v22 }
 0x383   :  { %3161 = vmatpush1.bf16.msra.mxu1 %v3160_v62 }
 0x384   :  { %3163 = vmatprep.subr.bf16.mxu1 %v3162_v41 }
 0x387   :  { %3165 = vmatpush1.bf16.msra.mxu1 %v3164_v15 }
 0x388   :  { %3167 = vmatprep.subr.bf16.mxu1 %v3166_v9 }
 0x38b   :  { %3169 = vmatpush1.bf16.msra.mxu1 %v3168_v47 }
 0x38c   :  { %3171 = vmatprep.subr.bf16.mxu1 %v3170_v48 }
 0x38f   :  { %3173 = vmatpush1.bf16.msra.mxu1 %v3172_v58 }
 0x390   :  { %3175 = vmatprep.subr.bf16.mxu1 %v3174_v31 }
 0x393   :  { %3177 = vmatpush1.bf16.msra.mxu1 %v3176_v13 }
 0x394   :  { %3179 = vmatprep.subr.bf16.mxu1 %v3178_v14 }
 0x397   :  { %3181 = vmatpush1.bf16.msra.mxu1 %v3180_v3 }
 0x398   :  { %3183 = vmatprep.subr.bf16.mxu1 %v3654_v17 }
 0x39a   :  { %2386 = vmatmul.mubr.f32.vlgmr.msra.gmra.mrb[2].mxu1 %v4133_v49 }
 0x39b   :  { %3185 = vmatpush1.bf16.msra.mxu1 %v3673_v59  ;;  %2488 = vmatprep.mubr.f32.mxu1 %v4413_v25 }
 0x39c   :  { %3187 = vmatprep.subr.bf16.mxu1 %v3708_v10 }
 0x39f   :  { %3189 = vmatpush1.bf16.msra.mxu1 %v3762_v36  ;;  %v1631_v36 = vlaneseq }
 0x3a0   :  { %3191 = vmatprep.subr.bf16.mxu1 %v3797_v35  ;;  %v1629_v35 = vld [vmem:[%s4286_s8] sm:$0x3] }
 0x3a1   :  { %v1632_v10 = vshrl.u32 %v1631_v36, 7 }
 0x3a3   :  { %3193 = vmatpush1.bf16.msra.mxu1 %v3815_v12  ;;  %v1637_v12 = vsub.s32 1, %v1632_v10 }
 0x3a4   :  { %3195 = vmatprep.subr.bf16.mxu1 %v3855_v4  ;;  %v1633_v4 = vsub.s32 0, %v1632_v10 }
 0x3a6   :  { %v1634_v18 = vrot.slane %v1629_v35, %v1633_v4 }
 0x3a7   :  { %3197 = vmatpush1.bf16.msra.mxu1 %v3912_v26  ;;  %v1638_v26 = vrot.slane %v1629_v35, %v1637_v12 }
 0x3a8   :  { %3199 = vmatprep.subr.bf16.mxu1 %v3937_v54 }
 0x3ab   :  { %3201 = vmatpush1.bf16.msra.mxu1 %v4085_v1 }
 0x3ac   :  { %3203 = vmatprep.subr.bf16.mxu1 %v4092_v20 }
 0x3af   :  { %3205 = vmatpush1.bf16.msra.mxu1 %v4098_v61 }
 0x3b0   :  { %3207 = vmatprep.subr.bf16.mxu1 %v4108_v37 }
 0x3b3   :  { %3209 = vmatpush1.bf16.msra.mxu1 %v4115_v27 }
 0x3b4   :  { %3211 = vmatprep.subr.bf16.mxu1 %v4118_v32 }
 0x3b7   :  { %3213 = vmatpush1.bf16.msra.mxu1 %v4120_v46 }
 0x3ba   :  { %2490 = vmatmul.mubr.f32.vlgmr.msra.gmra.mrb[2].mxu1 %v4133_v49 }
 0x415   :  { %v1744_v17 = vpop.f32.mrb[6].mxu0 }
 0x416   :  { %v1746_v59 = vpop.f32.mrb[7].mxu0  ;;  %v1745_v54 = vadd.f32 %v1744_v17, %v1634_v18 }
 0x417   :  { %v1747_v43 = vadd.f32 %v1746_v59, %v1638_v26 }
 0x48d   :  { %v2491_v5 = vpop.f32.mrb[2].mxu1 }
 0x48e   :  { %v3219_v34 = vadd.f32 %v2491_v5, %v1745_v54  ;;  %v2493_v25 = vpop.f32.mrb[3].mxu1 }
 0x48f   :  { %v3221_v50 = vadd.f32 %v2493_v25, %v1747_v43 }
 0x490   :  { %v2496_v51 = vmax.f32 %v3219_v34, 0.0 }
 0x491   :  { %v2497_v52 = vmax.f32 %v3221_v50, 0.0 }
 0x492   :  { %2498 = vst [vmem:[#allocation2] sm:$0xff] %v2496_v51 }
 0x493   :  { %2500 = vst.msk [vmem:[#allocation2 + $0x8] sm:$0xff] %vm2499_vm5, %v2497_v52 }
 0x494   :  { %3273 = shalt.err (!%p3270_p4)
}
 0x495   :  { %s3274_s12 = scalar_lea.hbm %s4287_s9, 256 }
 0x496   :  { %p3275_p5 = scmp.ne.s32.totalorder %s4287_s9, %s3274_s12  ;;  %p3278_p6 = scmp.lt.u32.totalorder %s3274_s12, %s4287_s9 }
 0x498   :  { %p3280_p7 = pnand %p3278_p6, %p3275_p5 }
 0x49a   :  { %3283 = shalt.err (!%p3280_p7)
}
 0x49b   :  { %2510 = dma.vmem_to_hbm [thread:$0]  %s2508_s30, 256, %s4287_s9, [#allocation3]  }
 0x49c   :  { %3284 = dma.done.wait [#allocation3], 256  }
 0x49d   :  { %3285 = vsyncadd [#allocation3], 4294967040 }
 0x49e   :  { %2514 = vsyncpa [#allocation3], 1 }

</bundles_post_ra>
